<compile_context>
chip_gen: v7x
topology: tpu7x:2x2x1
jax: 0.10.0
libtpu: 0.0.40
codegen_flags: <defaults>
</compile_context>

<pallas_src>
import jax
import jax.numpy as jnp
from jax.experimental import pallas as pl
from jax.experimental.pallas import tpu as pltpu


def _round_up(n: int, m: int) -> int:
    return ((n + m - 1) // m) * m


def _qnet_kernel(x_ref, w1_ref, b1_ref, w2_ref, b2_ref, w3t_ref, b3_ref,
                 q_ref, act_ref):
    n_features = x_ref.shape[1]
    n_actions = q_ref.shape[1]

    x = x_ref[...]                                      # (bb, F) f32

    # ---- fc1 + relu on the VPU ---------------------------------------------
    # K = n_features (4) is far too small to feed the MXU usefully; do it as
    # n_features broadcast multiply-adds over the (bb, 256) tile instead.
    acc = x[:, 0:1] * w1_ref[0:1, :]
    for k in range(1, n_features):
        acc = acc + x[:, k:k + 1] * w1_ref[k:k + 1, :]
    h1 = jnp.maximum(acc + b1_ref[...], 0.0).astype(jnp.bfloat16)

    # ---- fc2 + relu on the MXU (bf16 operands, f32 accumulation) -----------
    h2 = jnp.dot(h1, w2_ref[...], preferred_element_type=jnp.float32)
    h2 = jnp.maximum(h2 + b2_ref[...], 0.0)             # (bb, 256) f32

    # ---- fc3 on VPU + XLU ----------------------------------------------------
    # Only n_actions output columns are real; a 128-lane-padded MXU pass would
    # waste ~98% of its lanes and a third weight push.  Compute each column as
    # an elementwise multiply + cross-lane reduction (w3 is stored transposed
    # so each action's weights broadcast along sublanes).
    q_cols = []
    for j in range(n_actions):
        qj = jnp.sum(h2 * w3t_ref[j:j + 1, :], axis=-1, keepdims=True)
        qj = qj + b3_ref[:, j:j + 1]
        q_ref[:, j:j + 1] = qj
        q_cols.append(qj)

    # ---- fused greedy-action epilogue ---------------------------------------
    # Tiny compare/select chain (first-occurrence tie-break, like torch.argmax)
    # operating on (bb, 1) columns only -- no full-width iota/where/reductions.
    best_q = q_cols[0]
    best_i = jnp.zeros(best_q.shape, jnp.int32)
    for j in range(1, n_actions):
        better = q_cols[j] > best_q
        best_q = jnp.where(better, q_cols[j], best_q)
        best_i = jnp.where(better, jnp.int32(j), best_i)
    act_ref[...] = best_i


def prepare_qnet_params(params):
    """One-time parameter prep (call when parameters change, NOT per forward):
      w1, b1 : f32          (fc1 runs on the VPU)
      w2     : bf16         (fc2 is the single MXU matmul), b2 stays f32
      w3     : transposed to (n_actions, 256) f32 (fc3 runs on VPU+XLU)
      b3     : (1, n_actions) f32
    """
    w1, b1, w2, b2, w3, b3 = params
    return (jnp.asarray(w1, jnp.float32),
            jnp.asarray(b1, jnp.float32).reshape(1, -1),
            jnp.asarray(w2, jnp.bfloat16),
            jnp.asarray(b2, jnp.float32).reshape(1, -1),
            jnp.asarray(w3, jnp.float32).T,
            jnp.asarray(b3, jnp.float32).reshape(1, -1))


def qnet_forward(x, prepared_params, *, block_b=None, num_cores=1,
                 return_actions=False):
    """Q-values (and optionally greedy actions) for a batch of observations.

    `prepared_params` must come from prepare_qnet_params (done once per
    parameter update, not per call)."""
    w1, b1, w2, b2, w3t, b3 = prepared_params
    B, n_features = x.shape
    n_actions = w3t.shape[0]
    hidden1 = w1.shape[1]
    hidden2 = w2.shape[1]

    # Adaptive batch tile: one grid step for typical DQN batches (<= 512),
    # 16-row tiles (bf16 sublane granule) for the batch=1 acting path, and a
    # 512-row cap so the f32 activation slabs stay modest.
    if block_b is None:
        block_b = min(_round_up(B, 16), 512)
        if num_cores > 1 and B > 16:
            # v7x megacore: aim for >= num_cores balanced "parallel" tiles.
            block_b = min(block_b, _round_up(pl.cdiv(B, num_cores), 16))
    nb = pl.cdiv(B, block_b)
    Bp = nb * block_b

    x_in = x.astype(jnp.float32)
    if Bp != B:
        x_in = jnp.pad(x_in, ((0, Bp - B), (0, 0)))

    param_bytes = sum(int(p.size) * p.dtype.itemsize for p in prepared_params)
    cost = pl.CostEstimate(
        flops=2 * Bp * (n_features * hidden1 + hidden1 * hidden2
                        + hidden2 * n_actions),
        transcendentals=0,
        bytes_accessed=param_bytes + Bp * n_features * 4
                       + Bp * n_actions * 4 + Bp * 4)

    q_pad, act_pad = pl.pallas_call(
        _qnet_kernel,
        out_shape=(
            jax.ShapeDtypeStruct((Bp, n_actions), jnp.float32),
            jax.ShapeDtypeStruct((Bp, 1), jnp.int32),
        ),
        grid=(nb,),
        in_specs=[
            pl.BlockSpec((block_b, n_features), lambda i: (i, 0)),  # x tile
            # Weights/biases: constant index_map -> VMEM-resident across steps.
            pl.BlockSpec(w1.shape, lambda i: (0, 0)),
            pl.BlockSpec(b1.shape, lambda i: (0, 0)),
            pl.BlockSpec(w2.shape, lambda i: (0, 0)),
            pl.BlockSpec(b2.shape, lambda i: (0, 0)),
            pl.BlockSpec(w3t.shape, lambda i: (0, 0)),
            pl.BlockSpec(b3.shape, lambda i: (0, 0)),
        ],
        out_specs=(
            pl.BlockSpec((block_b, n_actions), lambda i: (i, 0)),
            pl.BlockSpec((block_b, 1), lambda i: (i, 0)),
        ),
        compiler_params=pltpu.CompilerParams(
            dimension_semantics=("parallel",)),     # shards batch tiles on v7x
        cost_estimate=cost,
    )(x_in, w1, b1, w2, b2, w3t, b3)

    q = q_pad if Bp == B else q_pad[:B]
    if return_actions:
        acts = act_pad[:, 0] if Bp == B else act_pad[:B, 0]
        return q, acts
    return q


def init_qnet_params(key, n_features=4, n_actions=2, hidden=256):
    """Deterministic init mirroring torch.nn.Linear default:
    U(-1/sqrt(fan_in), 1/sqrt(fan_in)) for weights and biases.
    Weights stored as (in_features, out_features)."""
    ks = jax.random.split(key, 6)

    def linear(kw, kb, fan_in, fan_out):
        bound = 1.0 / jnp.sqrt(jnp.float32(fan_in))
        w = jax.random.uniform(kw, (fan_in, fan_out), jnp.float32, -bound, bound)
        b = jax.random.uniform(kb, (1, fan_out), jnp.float32, -bound, bound)
        return w, b

    w1, b1 = linear(ks[0], ks[1], n_features, hidden)
    w2, b2 = linear(ks[2], ks[3], hidden, hidden)
    w3, b3 = linear(ks[4], ks[5], hidden, n_actions)
    return (w1, b1, w2, b2, w3, b3)


def qnet_reference_mixed(x, params):
    """Pure-JAX reference mirroring the kernel's dtype flow:
    f32 fc1, bf16 fc2 operands with f32 accumulation, f32 fc3."""
    w1, b1, w2, b2, w3, b3 = params
    h1 = jnp.maximum(x @ w1 + b1, 0.0).astype(jnp.bfloat16)
    h2 = jnp.dot(h1, w2.astype(jnp.bfloat16),
                 preferred_element_type=jnp.float32) + b2
    h2 = jnp.maximum(h2, 0.0)
    return h2 @ w3 + b3


def qnet_reference_f32(x, params):
    """Full-precision reference matching the PyTorch module semantics."""
    w1, b1, w2, b2, w3, b3 = params
    h1 = jnp.maximum(x @ w1 + b1, 0.0)
    h2 = jnp.maximum(h1 @ w2 + b2, 0.0)
    return h2 @ w3 + b3


# TODO(synk): get_action's epsilon-greedy branch (python `random`, .item()) is
# host-side control flow and stays outside the kernel; the greedy argmax part
# is fused into the kernel epilogue.

if __name__ == "__main__":
    key = jax.random.PRNGKey(0)
    k_params, k_x = jax.random.split(key)

    n_features, n_actions, batch = 4, 2, 2
    raw_params = init_qnet_params(k_params, n_features, n_actions)
    params = prepare_qnet_params(raw_params)        # one-time prep
    x = jax.random.normal(k_x, (batch, n_features), jnp.float32)

    q, actions = qnet_forward(x, params, return_actions=True)
    q, actions = jax.block_until_ready((q, actions))

    ref_mixed = qnet_reference_mixed(x, raw_params)
    ref_f32 = qnet_reference_f32(x, raw_params)

    assert q.shape == (batch, n_actions)
    assert actions.shape == (batch,)
    # Kernel matches a same-dtype-flow reference tightly...
    assert jnp.allclose(q, ref_mixed, atol=1e-3, rtol=1e-3)
    # ...and the full-f32 PyTorch-equivalent forward within bf16-fc2 tolerance.
    # (bf16 in fc2 can in principle flip the greedy action when top-2 Q-values
    #  are within ~1e-2 relative; acceptable for CartPole.)
    assert jnp.allclose(q, ref_f32, atol=3e-2, rtol=3e-2)
    # Fused greedy action is consistent with the Q-values the kernel produced.
    assert jnp.array_equal(actions, jnp.argmax(q, axis=-1).astype(jnp.int32))

    print("KERNEL_OK")
</pallas_src>

<mosaic_0001>
module attributes {stable_mosaic.version = 11 : i64} {
  func.func @_qnet_kernel(%arg0: i32, %arg1: memref<16x4xf32, #tpu.memory_space<vmem>>, %arg2: memref<4x256xf32, #tpu.memory_space<vmem>>, %arg3: memref<1x256xf32, #tpu.memory_space<vmem>>, %arg4: memref<256x256xbf16, #tpu.memory_space<vmem>>, %arg5: memref<1x256xf32, #tpu.memory_space<vmem>>, %arg6: memref<2x256xf32, #tpu.memory_space<vmem>>, %arg7: memref<1x2xf32, #tpu.memory_space<vmem>>, %arg8: memref<16x2xf32, #tpu.memory_space<vmem>>, %arg9: memref<16x1xi32, #tpu.memory_space<vmem>>) attributes {dimension_semantics = [#tpu.dimension_semantics<parallel>], iteration_bounds = array<i64: 1>, scalar_prefetch = 0 : i64, scratch_operands = 0 : i64, tpu.core_type = #tpu.core_type<tc>, window_params = [{transform_indices = @transform_0, window_bounds = array<i64: 16, 4>}, {pipeline_mode = #tpu.pipeline_mode<synchronous>, transform_indices = @transform_1, window_bounds = array<i64: 4, 256>}, {pipeline_mode = #tpu.pipeline_mode<synchronous>, transform_indices = @transform_2, window_bounds = array<i64: 1, 256>}, {pipeline_mode = #tpu.pipeline_mode<synchronous>, transform_indices = @transform_3, window_bounds = array<i64: 256, 256>}, {pipeline_mode = #tpu.pipeline_mode<synchronous>, transform_indices = @transform_4, window_bounds = array<i64: 1, 256>}, {pipeline_mode = #tpu.pipeline_mode<synchronous>, transform_indices = @transform_5, window_bounds = array<i64: 2, 256>}, {pipeline_mode = #tpu.pipeline_mode<synchronous>, transform_indices = @transform_6, window_bounds = array<i64: 1, 2>}, {transform_indices = @transform_7, window_bounds = array<i64: 16, 2>}, {transform_indices = @transform_8, window_bounds = array<i64: 16, 1>}]} {
    %c0 = arith.constant 0 : index
    %c0_0 = arith.constant 0 : index
    %0 = vector.load %arg1[%c0, %c0_0] : memref<16x4xf32, #tpu.memory_space<vmem>>, vector<16x4xf32>
    %1 = vector.extract_strided_slice %0 {offsets = [0, 0], sizes = [16, 1], strides = [1, 1]} : vector<16x4xf32> to vector<16x1xf32>
    %c0_1 = arith.constant 0 : index
    %c0_2 = arith.constant 0 : index
    %2 = vector.load %arg2[%c0_1, %c0_2] : memref<4x256xf32, #tpu.memory_space<vmem>>, vector<1x256xf32>
    %3 = vector.broadcast %1 : vector<16x1xf32> to vector<16x256xf32>
    %4 = vector.broadcast %2 : vector<1x256xf32> to vector<16x256xf32>
    %5 = arith.mulf %3, %4 : vector<16x256xf32>
    %6 = vector.extract_strided_slice %0 {offsets = [0, 1], sizes = [16, 1], strides = [1, 1]} : vector<16x4xf32> to vector<16x1xf32>
    %c1 = arith.constant 1 : index
    %c0_3 = arith.constant 0 : index
    %7 = vector.load %arg2[%c1, %c0_3] : memref<4x256xf32, #tpu.memory_space<vmem>>, vector<1x256xf32>
    %8 = vector.broadcast %6 : vector<16x1xf32> to vector<16x256xf32>
    %9 = vector.broadcast %7 : vector<1x256xf32> to vector<16x256xf32>
    %10 = arith.mulf %8, %9 : vector<16x256xf32>
    %11 = arith.addf %5, %10 : vector<16x256xf32>
    %12 = vector.extract_strided_slice %0 {offsets = [0, 2], sizes = [16, 1], strides = [1, 1]} : vector<16x4xf32> to vector<16x1xf32>
    %c2 = arith.constant 2 : index
    %c0_4 = arith.constant 0 : index
    %13 = vector.load %arg2[%c2, %c0_4] : memref<4x256xf32, #tpu.memory_space<vmem>>, vector<1x256xf32>
    %14 = vector.broadcast %12 : vector<16x1xf32> to vector<16x256xf32>
    %15 = vector.broadcast %13 : vector<1x256xf32> to vector<16x256xf32>
    %16 = arith.mulf %14, %15 : vector<16x256xf32>
    %17 = arith.addf %11, %16 : vector<16x256xf32>
    %18 = vector.extract_strided_slice %0 {offsets = [0, 3], sizes = [16, 1], strides = [1, 1]} : vector<16x4xf32> to vector<16x1xf32>
    %c3 = arith.constant 3 : index
    %c0_5 = arith.constant 0 : index
    %19 = vector.load %arg2[%c3, %c0_5] : memref<4x256xf32, #tpu.memory_space<vmem>>, vector<1x256xf32>
    %20 = vector.broadcast %18 : vector<16x1xf32> to vector<16x256xf32>
    %21 = vector.broadcast %19 : vector<1x256xf32> to vector<16x256xf32>
    %22 = arith.mulf %20, %21 : vector<16x256xf32>
    %23 = arith.addf %17, %22 : vector<16x256xf32>
    %c0_6 = arith.constant 0 : index
    %c0_7 = arith.constant 0 : index
    %24 = vector.load %arg3[%c0_6, %c0_7] : memref<1x256xf32, #tpu.memory_space<vmem>>, vector<1x256xf32>
    %25 = vector.broadcast %24 : vector<1x256xf32> to vector<16x256xf32>
    %26 = arith.addf %23, %25 : vector<16x256xf32>
    %cst = arith.constant 0.000000e+00 : f32
    %27 = vector.broadcast %cst : f32 to vector<16x256xf32>
    %28 = arith.maximumf %26, %27 : vector<16x256xf32>
    %29 = arith.truncf %28 : vector<16x256xf32> to vector<16x256xbf16>
    %c0_8 = arith.constant 0 : index
    %c0_9 = arith.constant 0 : index
    %30 = vector.load %arg4[%c0_8, %c0_9] : memref<256x256xbf16, #tpu.memory_space<vmem>>, vector<256x256xbf16>
    %cst_10 = arith.constant dense<0.000000e+00> : vector<16x256xf32>
    %31 = tpu.matmul %29, %30, %cst_10 {dimension_numbers = #tpu.dot_dimension_numbers<[1], [0], [0], [1], [0, 0, 1, 1], [], []>} : vector<16x256xbf16>, vector<256x256xbf16>, vector<16x256xf32> -> vector<16x256xf32>
    %c0_11 = arith.constant 0 : index
    %c0_12 = arith.constant 0 : index
    %32 = vector.load %arg5[%c0_11, %c0_12] : memref<1x256xf32, #tpu.memory_space<vmem>>, vector<1x256xf32>
    %33 = vector.broadcast %32 : vector<1x256xf32> to vector<16x256xf32>
    %34 = arith.addf %31, %33 : vector<16x256xf32>
    %cst_13 = arith.constant 0.000000e+00 : f32
    %35 = vector.broadcast %cst_13 : f32 to vector<16x256xf32>
    %36 = arith.maximumf %34, %35 : vector<16x256xf32>
    %c0_14 = arith.constant 0 : index
    %c0_15 = arith.constant 0 : index
    %37 = vector.load %arg6[%c0_14, %c0_15] : memref<2x256xf32, #tpu.memory_space<vmem>>, vector<1x256xf32>
    %38 = vector.broadcast %37 : vector<1x256xf32> to vector<16x256xf32>
    %39 = arith.mulf %36, %38 : vector<16x256xf32>
    %cst_16 = arith.constant dense<0.000000e+00> : vector<16xf32>
    %40 = vector.multi_reduction <add>, %39, %cst_16 [1] : vector<16x256xf32> to vector<16xf32>
    %41 = vector.shape_cast %40 : vector<16xf32> to vector<16x1xf32>
    %c0_17 = arith.constant 0 : index
    %c0_18 = arith.constant 0 : index
    %42 = vector.load %arg7[%c0_17, %c0_18] : memref<1x2xf32, #tpu.memory_space<vmem>>, vector<1x1xf32>
    %43 = vector.broadcast %42 : vector<1x1xf32> to vector<16x1xf32>
    %44 = arith.addf %41, %43 : vector<16x1xf32>
    %c0_19 = arith.constant 0 : index
    %c0_20 = arith.constant 0 : index
    %45 = vector.load %arg8[%c0_19, %c0_20] : memref<16x2xf32, #tpu.memory_space<vmem>>, vector<16x1xf32>
    tpu.vector_store %arg8[%c0_19, %c0_20], %44 {strides = array<i32>} : memref<16x2xf32, #tpu.memory_space<vmem>>, vector<16x1xf32>,
    %c1_21 = arith.constant 1 : index
    %c0_22 = arith.constant 0 : index
    %46 = vector.load %arg6[%c1_21, %c0_22] : memref<2x256xf32, #tpu.memory_space<vmem>>, vector<1x256xf32>
    %47 = vector.broadcast %46 : vector<1x256xf32> to vector<16x256xf32>
    %48 = arith.mulf %36, %47 : vector<16x256xf32>
    %cst_23 = arith.constant dense<0.000000e+00> : vector<16xf32>
    %49 = vector.multi_reduction <add>, %48, %cst_23 [1] : vector<16x256xf32> to vector<16xf32>
    %50 = vector.shape_cast %49 : vector<16xf32> to vector<16x1xf32>
    %c0_24 = arith.constant 0 : index
    %c1_25 = arith.constant 1 : index
    %51 = vector.load %arg7[%c0_24, %c1_25] : memref<1x2xf32, #tpu.memory_space<vmem>>, vector<1x1xf32>
    %52 = vector.broadcast %51 : vector<1x1xf32> to vector<16x1xf32>
    %53 = arith.addf %50, %52 : vector<16x1xf32>
    %c0_26 = arith.constant 0 : index
    %c1_27 = arith.constant 1 : index
    %54 = vector.load %arg8[%c0_26, %c1_27] : memref<16x2xf32, #tpu.memory_space<vmem>>, vector<16x1xf32>
    tpu.vector_store %arg8[%c0_26, %c1_27], %53 {strides = array<i32>} : memref<16x2xf32, #tpu.memory_space<vmem>>, vector<16x1xf32>,
    %c0_i32 = arith.constant 0 : i32
    %55 = vector.broadcast %c0_i32 : i32 to vector<16x1xi32>
    %56 = arith.cmpf ogt, %53, %44 : vector<16x1xf32>
    %c1_i32 = arith.constant 1 : i32
    %57 = vector.broadcast %c1_i32 : i32 to vector<16x1xi32>
    %58 = arith.select %56, %57, %55 : vector<16x1xi1>, vector<16x1xi32>
    %c0_28 = arith.constant 0 : index
    %c0_29 = arith.constant 0 : index
    %59 = vector.load %arg9[%c0_28, %c0_29] : memref<16x1xi32, #tpu.memory_space<vmem>>, vector<16x1xi32>
    tpu.vector_store %arg9[%c0_28, %c0_29], %58 {strides = array<i32>} : memref<16x1xi32, #tpu.memory_space<vmem>>, vector<16x1xi32>,
    return
  }
  func.func @transform_0(%arg0: i32) -> (i32, i32) {
    %c0_i32 = arith.constant 0 : i32
    %c0_i32_0 = arith.constant 0 : i32
    return %arg0, %c0_i32 : i32, i32
  }
  func.func @transform_1(%arg0: i32) -> (i32, i32) {
    %c0_i32 = arith.constant 0 : i32
    %c0_i32_0 = arith.constant 0 : i32
    %c0_i32_1 = arith.constant 0 : i32
    return %c0_i32, %c0_i32_0 : i32, i32
  }
  func.func @transform_2(%arg0: i32) -> (i32, i32) {
    %c0_i32 = arith.constant 0 : i32
    %c0_i32_0 = arith.constant 0 : i32
    %c0_i32_1 = arith.constant 0 : i32
    return %c0_i32, %c0_i32_0 : i32, i32
  }
  func.func @transform_3(%arg0: i32) -> (i32, i32) {
    %c0_i32 = arith.constant 0 : i32
    %c0_i32_0 = arith.constant 0 : i32
    %c0_i32_1 = arith.constant 0 : i32
    return %c0_i32, %c0_i32_0 : i32, i32
  }
  func.func @transform_4(%arg0: i32) -> (i32, i32) {
    %c0_i32 = arith.constant 0 : i32
    %c0_i32_0 = arith.constant 0 : i32
    %c0_i32_1 = arith.constant 0 : i32
    return %c0_i32, %c0_i32_0 : i32, i32
  }
  func.func @transform_5(%arg0: i32) -> (i32, i32) {
    %c0_i32 = arith.constant 0 : i32
    %c0_i32_0 = arith.constant 0 : i32
    %c0_i32_1 = arith.constant 0 : i32
    return %c0_i32, %c0_i32_0 : i32, i32
  }
  func.func @transform_6(%arg0: i32) -> (i32, i32) {
    %c0_i32 = arith.constant 0 : i32
    %c0_i32_0 = arith.constant 0 : i32
    %c0_i32_1 = arith.constant 0 : i32
    return %c0_i32, %c0_i32_0 : i32, i32
  }
  func.func @transform_7(%arg0: i32) -> (i32, i32) {
    %c0_i32 = arith.constant 0 : i32
    %c0_i32_0 = arith.constant 0 : i32
    return %arg0, %c0_i32 : i32, i32
  }
  func.func @transform_8(%arg0: i32) -> (i32, i32) {
    %c0_i32 = arith.constant 0 : i32
    %c0_i32_0 = arith.constant 0 : i32
    return %arg0, %c0_i32 : i32, i32
  }
}

</mosaic_0001>

<bundles_post_ra>
// kernel: tpu_custom_call.1
= control target key start
LH: loop header
LB: loop body
LE: loop exit
PB: predicated region body
PF: predicated region fallthrough
CT: control target
= control target key end

     0   :  { %14 = vsyncpa [#allocation3], 0  ;;  %s651_s27 = smov [#allocation2]   ;;  %s795_s0 = inlined_call_operand.vmem [shape: f32[16,4], index: 0, kind: input, shape index: {}]   ;;  %s796_s1 = inlined_call_operand.vmem [shape: f32[4,256], index: 1, kind: input, shape index: {}]   ;;  %s797_s2 = inlined_call_operand.vmem [shape: f32[1,256], index: 2, kind: input, shape index: {}]   ;;  %s798_s3 = inlined_call_operand.hbm [shape: bf16[256,256], index: 3, kind: input, shape index: {}]   ;;  %s799_s4 = inlined_call_operand.vmem [shape: f32[1,256], index: 4, kind: input, shape index: {}]   ;;  %s800_s5 = inlined_call_operand.vmem [shape: f32[2,256], index: 5, kind: input, shape index: {}]   ;;  %s801_s6 = inlined_call_operand.vmem [shape: f32[1,2], index: 6, kind: input, shape index: {}]   ;;  %s802_s7 = inlined_call_operand.vmem [shape: f32[16,2], index: 7, kind: output, shape index: {0}]   ;;  %s803_s8 = inlined_call_operand.vmem [shape: s32[16,1], index: 8, kind: output, shape index: {1}]  }
   0x1   :  { %s26_s28 = sshll.u32 %s651_s27, 4  ;;  %s627_s9 = scalar_lea.hbm %s798_s3, 4096  ;;  %s27_s28 = int_to_ptr.vmem [resolvable:$true] %s26_s28 }
   0x2   :  { %p628_p0 = scmp.ne.s32.totalorder %s798_s3, %s627_s9  ;;  %p631_p1 = scmp.lt.u32.totalorder %s627_s9, %s798_s3 }
   0x4   :  { %p633_p2 = pnand %p631_p1, %p628_p0 }
   0x6   :  { %636 = shalt.err (!%p633_p2)
}
   0x7   :  { %s637_s14 = scalar_lea.vmem %s27_s28, 4096  ;;  %p642_p4 = scmp.lt.s32.totalorder %s27_s28, %s27_s28 }
   0x8   :  { %p638_p3 = scmp.ne.s32.totalorder %s27_s28, %s637_s14  ;;  %p643_p5 = scmp.lt.s32.totalorder %s637_s14, %s637_s14 }
   0xa   :  { %p644_p6 = por %p643_p5, %p642_p4 }
   0xc   :  { %p645_p7 = pnand %p644_p6, %p638_p3 }
   0xe   :  { %648 = shalt.err (!%p645_p7)
}
   0xf   :  { %s652_s15 = smov 128   ;;  %s653_s16 = smov 8  }
  0x10   :  { %32 = dma.hbm_to_vmem [thread:$0]  %s798_s3, 4096, %s27_s28, [#allocation3], %s652_s15, %s652_s15, %s653_s16  }
  0x11   :  { %649 = dma.done.wait [#allocation3], 4096  }
  0x12   :  { %650 = vsyncadd [#allocation3], 4294963200  ;;  %v654_v0 = vmov 1   ;;  %v655_v1 = vmov 0   ;;  %v42_v2 = vld [vmem:[%s795_s0] sm:$0xff]  ;;  %v43_v3 = vld [vmem:[%s795_s0 + $0x8] sm:$0xff]  ;;  %v56_v38 = vlaneseq }
  0x13   :  { %574 = vset.pattern.permute.xlu1 %v654_v0  ;;  %573 = vset.pattern.permute.xlu0 %v655_v1  ;;  %v579_v4 = vld [vmem:[#allocation2 + $0x4] ss:$8 sps:$4 sm:$0xff]   ;;  %v581_v5 = vld [vmem:[#allocation2] ss:$8 sps:$4 sm:$0xff]   ;;  %v582_v6 = vld [vmem:[#allocation2 + $0x14] ss:$8 sps:$4 sm:$0xff]  }
  0x14   :  { %73 = vperm.xlu1 %574, %v42_v2   ;;  %47 = vperm.xlu0 %573, %v42_v2   ;;  %v584_v7 = vld [vmem:[#allocation2 + $0x10] ss:$8 sps:$4 sm:$0xff]   ;;  %v585_v8 = vld [vmem:[#allocation2 + $0x24] ss:$8 sps:$4 sm:$0xff]   ;;  %v587_v9 = vld [vmem:[#allocation2 + $0x20] ss:$8 sps:$4 sm:$0xff]  }
  0x15   :  { %383 = vmatprep.subr.bf16.mxu0 %v579_v4  ;;  %v656_v10 = vmov 2   ;;  %v588_v11 = vld [vmem:[#allocation2 + $0x34] ss:$8 sps:$4 sm:$0xff]   ;;  %v590_v12 = vld [vmem:[#allocation2 + $0x30] ss:$8 sps:$4 sm:$0xff]   ;;  %v657_v14 = vmov 3  }
  0x16   :  { %384 = vmatpush1.bf16.msra.mxu0 %v581_v5  ;;  %v591_v13 = vld [vmem:[#allocation2 + $0x44] ss:$8 sps:$4 sm:$0xff]   ;;  %v593_v15 = vld [vmem:[#allocation2 + $0x40] ss:$8 sps:$4 sm:$0xff]   ;;  %v594_v16 = vld [vmem:[#allocation2 + $0x54] ss:$8 sps:$4 sm:$0xff]  }
  0x17   :  { %385 = vmatprep.subr.bf16.mxu0 %v582_v6  ;;  %v596_v17 = vld [vmem:[#allocation2 + $0x50] ss:$8 sps:$4 sm:$0xff]   ;;  %v597_v18 = vld [vmem:[#allocation2 + $0x64] ss:$8 sps:$4 sm:$0xff]   ;;  %v599_v19 = vld [vmem:[#allocation2 + $0x60] ss:$8 sps:$4 sm:$0xff]  }
  0x18   :  { %77 = vperm.xlu1 %574, %v43_v3   ;;  %52 = vperm.xlu0 %573, %v43_v3   ;;  %v600_v20 = vld [vmem:[#allocation2 + $0x74] ss:$8 sps:$4 sm:$0xff]   ;;  %v602_v21 = vld [vmem:[#allocation2 + $0x70] ss:$8 sps:$4 sm:$0xff]   ;;  %v603_v22 = vld [vmem:[#allocation2 + $0x84] ss:$8 sps:$4 sm:$0xff]  }
  0x19   :  { %v605_v23 = vld [vmem:[#allocation2 + $0x80] ss:$8 sps:$4 sm:$0xff]   ;;  %v606_v24 = vld [vmem:[#allocation2 + $0x94] ss:$8 sps:$4 sm:$0xff]   ;;  %v608_v25 = vld [vmem:[#allocation2 + $0x90] ss:$8 sps:$4 sm:$0xff]  }
  0x1a   :  { %386 = vmatpush1.bf16.msra.mxu0 %v584_v7  ;;  %v609_v26 = vld [vmem:[#allocation2 + $0xa4] ss:$8 sps:$4 sm:$0xff]   ;;  %v611_v27 = vld [vmem:[#allocation2 + $0xa0] ss:$8 sps:$4 sm:$0xff]   ;;  %v612_v28 = vld [vmem:[#allocation2 + $0xb4] ss:$8 sps:$4 sm:$0xff]  }
  0x1b   :  { %387 = vmatprep.subr.bf16.mxu0 %v585_v8  ;;  %v614_v29 = vld [vmem:[#allocation2 + $0xb0] ss:$8 sps:$4 sm:$0xff]   ;;  %v615_v30 = vld [vmem:[#allocation2 + $0xc4] ss:$8 sps:$4 sm:$0xff]   ;;  %v617_v31 = vld [vmem:[#allocation2 + $0xc0] ss:$8 sps:$4 sm:$0xff]  }
  0x1c   :  { %576 = vset.pattern.permute.xlu1 %v656_v10  ;;  %575 = vset.pattern.permute.xlu0 %v656_v10  ;;  %v618_v32 = vld [vmem:[#allocation2 + $0xd4] ss:$8 sps:$4 sm:$0xff]   ;;  %v620_v33 = vld [vmem:[#allocation2 + $0xd0] ss:$8 sps:$4 sm:$0xff]   ;;  %v621_v34 = vld [vmem:[#allocation2 + $0xe4] ss:$8 sps:$4 sm:$0xff]  }
  0x1d   :  { %106 = vperm.xlu1 %576, %v43_v3   ;;  %102 = vperm.xlu0 %575, %v42_v2   ;;  %v623_v35 = vld [vmem:[#allocation2 + $0xe0] ss:$8 sps:$4 sm:$0xff]   ;;  %v624_v36 = vld [vmem:[#allocation2 + $0xf4] ss:$8 sps:$4 sm:$0xff]   ;;  %v626_v37 = vld [vmem:[#allocation2 + $0xf0] ss:$8 sps:$4 sm:$0xff]  }
  0x1e   :  { %388 = vmatpush1.bf16.msra.mxu0 %v587_v9  ;;  %v57_v39 = vshrl.u32 %v56_v38, 7  ;;  %v526_v42 = vld [vmem:[%s796_s1 + $0x1] ss:$4 sm:$0x3]  ;;  %vm461_vm0 = vcmask 7168   ;;  %s658_s15 = smov 1  }
  0x1f   :  { %389 = vmatprep.subr.bf16.mxu0 %v588_v11  ;;  %v44_v44 = vld [vmem:[%s796_s1] ss:$4 sm:$0x3]  ;;  %v527_v50 = vld [vmem:[%s796_s1 + $0x2] ss:$4 sm:$0x3] }
  0x20   :  { %v724_v40 = vsub.s32 0, %v57_v39  ;;  %v726_v41 = vsub.s32 1, %v57_v39  ;;  %v528_v63 = vld [vmem:[%s796_s1 + $0x3] ss:$4 sm:$0x3]  ;;  %vm496_vm1 = vcmask 15368  }
  0x21   :  { %577 = vset.pattern.permute.xlu1 %v657_v14  ;;  %578 = vset.pattern.permute.xlu0 %v657_v14  ;;  %v157_v7 = vld [vmem:[%s797_s2] sm:$0x3]  ;;  %s659_s21 = smov 127  }
  0x22   :  { %131 = vperm.xlu1 %577, %v42_v2   ;;  %135 = vperm.xlu0 %578, %v43_v3   ;;  %v84_v46 = vrot.slane %v526_v42, %v724_v40  ;;  %v88_v47 = vrot.slane %v526_v42, %v726_v41  ;;  %v59_v48 = vrot.slane %v44_v44, %v724_v40  ;;  %v211_v42 = vld [vmem:[%s799_s4] sm:$0x3] }
  0x23   :  { %390 = vmatpush1.bf16.msra.mxu0 %v590_v12  ;;  %v63_v49 = vrot.slane %v44_v44, %v726_v41  ;;  %v113_v53 = vrot.slane %v527_v50, %v724_v40  ;;  %v117_v54 = vrot.slane %v527_v50, %v726_v41  ;;  %v142_v8 = vrot.slane %v528_v63, %v724_v40  ;;  %v430_v44 = vld [vmem:[%s800_s5] ss:$2 sm:$0x3] }
  0x24   :  { %391 = vmatprep.subr.bf16.mxu0 %v591_v13  ;;  %v146_v9 = vrot.slane %v528_v63, %v726_v41  ;;  %v162_v14 = vrot.slane %v157_v7, %v724_v40 }
  0x27   :  { %392 = vmatpush1.bf16.msra.mxu0 %v593_v15  ;;  %v166_v15 = vrot.slane %v157_v7, %v726_v41 }
  0x28   :  { %393 = vmatprep.subr.bf16.mxu0 %v594_v16 }
  0x2b   :  { %394 = vmatpush1.bf16.msra.mxu0 %v596_v17 }
  0x2c   :  { %395 = vmatprep.subr.bf16.mxu0 %v597_v18 }
  0x2f   :  { %396 = vmatpush1.bf16.msra.mxu0 %v599_v19 }
  0x30   :  { %397 = vmatprep.subr.bf16.mxu0 %v600_v20 }
  0x33   :  { %398 = vmatpush1.bf16.msra.mxu0 %v602_v21 }
  0x34   :  { %399 = vmatprep.subr.bf16.mxu0 %v603_v22 }
  0x37   :  { %400 = vmatpush1.bf16.msra.mxu0 %v605_v23 }
  0x38   :  { %401 = vmatprep.subr.bf16.mxu0 %v606_v24 }
  0x3b   :  { %402 = vmatpush1.bf16.msra.mxu0 %v608_v25 }
  0x3c   :  { %403 = vmatprep.subr.bf16.mxu0 %v609_v26 }
  0x3f   :  { %404 = vmatpush1.bf16.msra.mxu0 %v611_v27 }
  0x40   :  { %405 = vmatprep.subr.bf16.mxu0 %v612_v28 }
  0x43   :  { %406 = vmatpush1.bf16.msra.mxu0 %v614_v29 }
  0x44   :  { %407 = vmatprep.subr.bf16.mxu0 %v615_v30 }
  0x47   :  { %408 = vmatpush1.bf16.msra.mxu0 %v617_v31 }
  0x48   :  { %409 = vmatprep.subr.bf16.mxu0 %v618_v32 }
  0x4b   :  { %410 = vmatpush1.bf16.msra.mxu0 %v620_v33 }
  0x4c   :  { %411 = vmatprep.subr.bf16.mxu0 %v621_v34 }
  0x4f   :  { %412 = vmatpush1.bf16.msra.mxu0 %v623_v35 }
  0x50   :  { %413 = vmatprep.subr.bf16.mxu0 %v624_v36 }
  0x53   :  { %414 = vmatpush1.bf16.msra.mxu0 %v626_v37 }
  0x93   :  { %v74_v43 = vpop.permute.xlu1 %73  ;;  %v48_v45 = vpop.permute.xlu0 %47 }
  0x94   :  { %v91_v55 = vmul.f32 %v84_v46, %v74_v43  ;;  %v92_v56 = vmul.f32 %v88_v47, %v74_v43  ;;  %v66_v57 = vmul.f32 %v59_v48, %v48_v45  ;;  %v67_v58 = vmul.f32 %v63_v49, %v48_v45  ;;  %v562_v45 = vld [vmem:[%s800_s5 + $0x1] ss:$2 sm:$0x3] }
  0x95   :  { %v216_v43 = vrot.slane %v211_v42, %v724_v40  ;;  %v470_v50 = vrot.slane %v562_v45, %v724_v40 }
  0x96   :  { %v95_v10 = vadd.f32 %v91_v55, %v66_v57  ;;  %v96_v11 = vadd.f32 %v92_v56, %v67_v58 }
  0x97   :  { %v78_v51 = vpop.permute.xlu1 %77  ;;  %v53_v52 = vpop.permute.xlu0 %52 }
  0x98   :  { %v93_v59 = vmul.f32 %v84_v46, %v78_v51  ;;  %v94_v60 = vmul.f32 %v88_v47, %v78_v51  ;;  %v68_v61 = vmul.f32 %v59_v48, %v53_v52  ;;  %v69_v62 = vmul.f32 %v63_v49, %v53_v52 }
  0x99   :  { %v220_v46 = vrot.slane %v211_v42, %v726_v41  ;;  %v435_v49 = vrot.slane %v430_v44, %v724_v40 }
  0x9a   :  { %v97_v12 = vadd.f32 %v93_v59, %v68_v61  ;;  %v98_v13 = vadd.f32 %v94_v60, %v69_v62 }
  0x9c   :  { %v107_v0 = vpop.permute.xlu1 %106  ;;  %v103_v2 = vpop.permute.xlu0 %102 }
  0x9d   :  { %v122_v3 = vmul.f32 %v113_v53, %v107_v0  ;;  %v123_v4 = vmul.f32 %v117_v54, %v107_v0  ;;  %v120_v5 = vmul.f32 %v113_v53, %v103_v2  ;;  %v121_v6 = vmul.f32 %v117_v54, %v103_v2 }
  0x9e   :  { %v439_v53 = vrot.slane %v430_v44, %v726_v41  ;;  %v474_v54 = vrot.slane %v562_v45, %v726_v41 }
  0x9f   :  { %v126_v16 = vadd.f32 %v122_v3, %v97_v12  ;;  %v127_v17 = vadd.f32 %v123_v4, %v98_v13  ;;  %v124_v18 = vadd.f32 %v120_v5, %v95_v10  ;;  %v125_v19 = vadd.f32 %v121_v6, %v96_v11  ;;  %v561_v10 = vld [vmem:[%s801_s6] ss:$0 sm:$0xff] }
  0xa1   :  { %v132_v20 = vpop.permute.xlu1 %131  ;;  %v136_v21 = vpop.permute.xlu0 %135 }
  0xa2   :  { %v149_v22 = vmul.f32 %v142_v8, %v132_v20  ;;  %v150_v23 = vmul.f32 %v146_v9, %v132_v20  ;;  %v151_v24 = vmul.f32 %v142_v8, %v136_v21  ;;  %v152_v25 = vmul.f32 %v146_v9, %v136_v21 }
  0xa4   :  { %v153_v26 = vadd.f32 %v149_v22, %v124_v18  ;;  %v154_v27 = vadd.f32 %v150_v23, %v125_v19  ;;  %v155_v28 = vadd.f32 %v151_v24, %v126_v16  ;;  %v156_v29 = vadd.f32 %v152_v25, %v127_v17 }
  0xa6   :  { %v170_v30 = vadd.f32 %v166_v15, %v154_v27  ;;  %v172_v31 = vadd.f32 %v166_v15, %v156_v29  ;;  %v169_v32 = vadd.f32 %v162_v14, %v153_v26  ;;  %v171_v33 = vadd.f32 %v162_v14, %v155_v28 }
  0xa8   :  { %v174_v34 = vmax.f32 %v170_v30, 0.0  ;;  %v176_v35 = vmax.f32 %v172_v31, 0.0  ;;  %v173_v36 = vmax.f32 %v169_v32, 0.0  ;;  %v175_v37 = vmax.f32 %v171_v33, 0.0 }
  0xaa   :  { %v178_v38 = vpack.c.bf16 %v176_v35, %v174_v34  ;;  %v177_v39 = vpack.c.bf16 %v175_v37, %v173_v36 }
  0xac   :  { %415 = vmatprep.mubr.bf16.mxu0 %v178_v38 }
  0xad   :  { %416 = vmatmul.mubr.bf16.vlgmr.msra.gmra.mrb[0].mxu0 %v177_v39 }
 0x180   :  { %v417_v47 = vpop.f32.mrb[0].mxu0 }
 0x181   :  { %v418_v48 = vadd.f32 %v417_v47, %v216_v43  ;;  %v419_v51 = vpop.f32.mrb[1].mxu0 }
 0x182   :  { %v420_v52 = vadd.f32 %v419_v51, %v220_v46  ;;  %v421_v55 = vpop.f32.mrb[2].mxu0 }
 0x183   :  { %v426_v56 = vmax.f32 %v418_v48, 0.0  ;;  %v422_v57 = vadd.f32 %v421_v55, %v216_v43  ;;  %v423_v58 = vpop.f32.mrb[3].mxu0 }
 0x184   :  { %v427_v59 = vmax.f32 %v420_v52, 0.0  ;;  %v424_v60 = vadd.f32 %v423_v58, %v220_v46 }
 0x185   :  { %v442_v61 = vmul.f32 %v435_v49, %v426_v56  ;;  %v477_v62 = vmul.f32 %v470_v50, %v426_v56  ;;  %v428_v63 = vmax.f32 %v422_v57, 0.0 }
 0x186   :  { %v443_v0 = vmul.f32 %v439_v53, %v427_v59  ;;  %v478_v2 = vmul.f32 %v474_v54, %v427_v59  ;;  %v429_v3 = vmax.f32 %v424_v60, 0.0 }
 0x187   :  { %v444_v4 = vmul.f32 %v435_v49, %v428_v63  ;;  %v479_v40 = vmul.f32 %v470_v50, %v428_v63 }
 0x188   :  { %v445_v5 = vmul.f32 %v439_v53, %v429_v3  ;;  %v480_v6 = vmul.f32 %v474_v54, %v429_v3  ;;  %v446_v7 = vadd.f32 %v443_v0, %v442_v61  ;;  %v481_v8 = vadd.f32 %v478_v2, %v477_v62 }
 0x18a   :  { %447 = vadd.xlane.f32.xlu1 %v446_v7  ;;  %v449_v41 = vadd.f32 %v445_v5, %v444_v4  ;;  %v484_v9 = vadd.f32 %v480_v6, %v479_v40 }
 0x18c   :  { %450 = vadd.xlane.f32.xlu0 %v449_v41 }
 0x18e   :  { %482 = vadd.xlane.f32.xlu1 %v481_v8 }
 0x190   :  { %485 = vadd.xlane.f32.xlu0 %v484_v9 }
 0x217   :  { %v448_v11 = vpop.xlane.xlu1 %447 }
 0x218   :  { %v459_v12 = vadd.f32 %v561_v10, %v448_v11 }
 0x219   :  { %v451_v13 = vpop.xlane.xlu0 %450 }
 0x21a   :  { %462 = vst.msk [vmem:[%s802_s7] sm:$0xff] %vm461_vm0, %v459_v12  ;;  %v460_v14 = vadd.f32 %v561_v10, %v451_v13  ;;  %501 = vrot.lane.b32.xlu1 %v459_v12, %s658_s15 }
 0x21b   :  { %v483_v15 = vpop.xlane.xlu1 %482 }
 0x21c   :  { %463 = vst.msk [vmem:[%s802_s7 + $0x8] sm:$0xff] %vm461_vm0, %v460_v14  ;;  %v494_v16 = vadd.f32 %v561_v10, %v483_v15  ;;  %503 = vrot.lane.b32.xlu0 %v460_v14, %s658_s15 }
 0x21d   :  { %v486_v17 = vpop.xlane.xlu0 %485 }
 0x21e   :  { %497 = vst.msk [vmem:[%s802_s7] sm:$0xff] %vm496_vm1, %v494_v16  ;;  %v495_v18 = vadd.f32 %v561_v10, %v486_v17 }
 0x220   :  { %498 = vst.msk [vmem:[%s802_s7 + $0x8] sm:$0xff] %vm496_vm1, %v495_v18 }
 0x28c   :  { %v502_v19 = vpop.permute.xlu1 %501 }
 0x28d   :  { %vm507_vm2 = vcmp.gt.f32.partialorder %v494_v16, %v502_v19 }
 0x28e   :  { %v509_v20 = vsel %vm507_vm2, 1, %v655_v1  ;;  %v504_v21 = vpop.permute.xlu0 %503 }
 0x28f   :  { %vm508_vm3 = vcmp.gt.f32.partialorder %v495_v18, %v504_v21  ;;  %511 = vrot.lane.b32.xlu1 %v509_v20, %s659_s21 }
 0x290   :  { %v510_v22 = vsel %vm508_vm3, 1, %v655_v1 }
 0x293   :  { %513 = vrot.lane.b32.xlu1 %v510_v22, %s659_s21 }
 0x301   :  { %v512_v23 = vpop.permute.xlu1 %511 }
 0x302   :  { %515 = vst.msk [vmem:[%s803_s8] sm:$0xff] %vm461_vm0, %v512_v23 }
 0x305   :  { %v514_v24 = vpop.permute.xlu1 %513 }
 0x306   :  { %516 = vst.msk [vmem:[%s803_s8 + $0x8] sm:$0xff] %vm461_vm0, %v514_v24 }
 0x307   :  { %525 = vsyncpa [#allocation3], 1 }

</bundles_post_ra>
